<compile_context>
chip_gen: v5e
topology: v5e:2x2
jax: 0.10.0
libtpu: 0.0.40
codegen_flags: <defaults>
</compile_context>

<pallas_src>
import functools

import jax
import jax.numpy as jnp
from jax.experimental import pallas as pl
from jax.experimental.pallas import tpu as pltpu


INPUT_DIM = 4
HIDDEN_UNITS = [32, 32]
OUTPUT_DIM = 1

H_PAD = 128                 # hidden widths 32 -> 128 (lane granule)
ROW_ALIGN = 8               # batch rows per sublane granule
DEFAULT_BLOCK_ROWS = 4096   # batch tile; sweep 2048-8192 per generation if needed


def _round_up(n, m):
    return ((n + m - 1) // m) * m


def _mlp_kernel(x_ref, w0_ref, b0_ref, w1_ref, b1_ref, w2t_ref, b2_ref, o_ref):
    """Fused MLP: (Linear -> ReLU) x 2 -> narrow Linear mean head."""
    x = x_ref[...]                                  # (TB, in_dim), in_dim tiny (4)
    in_dim = x_ref.shape[-1]
    out_dim = o_ref.shape[-1]

    # Layer 0 on the VPU: in_dim is tiny, so broadcast multiply-accumulate
    # beats a K=4 MXU pass and needs no feature padding of x.
    h = b0_ref[...] + x[:, 0:1] * w0_ref[0:1, :]
    for k in range(1, in_dim):
        h = h + x[:, k:k + 1] * w0_ref[k:k + 1, :]
    h = jnp.maximum(h, 0.0)                         # (TB, H_PAD)

    # Layer 1 on the MXU: (TB,128) @ (128,128).
    h = jnp.dot(h, w1_ref[...], preferred_element_type=jnp.float32) + b1_ref[...]
    h = jnp.maximum(h, 0.0)                         # (TB, H_PAD)

    # Mean head: VPU multiply + lane reduction per output column; the output
    # is stored narrow ((TB, out_dim)), not a 128-wide padded slab.
    for j in range(out_dim):
        col = jnp.sum(h * w2t_ref[j:j + 1, :], axis=-1, keepdims=True)
        o_ref[:, j:j + 1] = (col + b2_ref[:, j:j + 1]).astype(o_ref.dtype)


def _pad2(a, rows, cols):
    return jnp.pad(a, ((0, rows - a.shape[0]), (0, cols - a.shape[1])))


@functools.partial(jax.jit, static_argnames=("block_rows",))
def gaussian_fcn_forward(x, params, block_rows=DEFAULT_BLOCK_ROWS):
    """GaussianFCN.forward: returns (mean [B, output_dim], std [output_dim]).

    x      : [B, input_dim] float32
    params : dict with w0,b0,w1,b1,w2,b2 (weights [in, out], biases [1, out])
             and log_std ([output_dim]).
    """
    batch, in_dim = x.shape
    out_dim = params["w2"].shape[1]

    # Pad ONLY the hidden dims to the 128-lane granule (tiny arrays; exact math).
    w0 = _pad2(params["w0"], in_dim, H_PAD)          # (in_dim, 128)
    b0 = _pad2(params["b0"], 1, H_PAD)               # (1, 128)
    w1 = _pad2(params["w1"], H_PAD, H_PAD)           # (128, 128)
    b1 = _pad2(params["b1"], 1, H_PAD)               # (1, 128)
    w2t = _pad2(params["w2"].T, out_dim, H_PAD)      # (out_dim, 128) rows = out cols
    b2 = params["b2"]                                # (1, out_dim)

    # Batch tiling: no wrapper-side padding of x; Pallas handles the ragged
    # last block (padded rows are never written back).
    tb = min(block_rows, _round_up(batch, ROW_ALIGN))
    if batch > ROW_ALIGN:
        # v7x: guarantee >= 2 grid steps so both TensorCores get work.
        tb = min(tb, _round_up(-(-batch // 2), ROW_ALIGN))
    grid = (pl.cdiv(batch, tb),)

    cost = pl.CostEstimate(
        flops=2 * batch * (in_dim * H_PAD + H_PAD * H_PAD + H_PAD * out_dim),
        transcendentals=0,
        bytes_accessed=4 * (batch * (in_dim + out_dim)
                            + in_dim * H_PAD + H_PAD
                            + H_PAD * H_PAD + H_PAD
                            + out_dim * H_PAD + out_dim),
    )

    resident = lambda shape: pl.BlockSpec(shape, lambda i: (0, 0))

    mean = pl.pallas_call(
        _mlp_kernel,
        out_shape=jax.ShapeDtypeStruct((batch, out_dim), jnp.float32),
        grid=grid,
        in_specs=[
            pl.BlockSpec((tb, in_dim), lambda i: (i, 0)),   # x: streamed per tile
            resident((in_dim, H_PAD)),                      # w0
            resident((1, H_PAD)),                           # b0
            resident((H_PAD, H_PAD)),                       # w1
            resident((1, H_PAD)),                           # b1
            resident((out_dim, H_PAD)),                     # w2^T (mean head)
            resident((1, out_dim)),                         # b2
        ],
        out_specs=pl.BlockSpec((tb, out_dim), lambda i: (i, 0)),
        compiler_params=pltpu.CompilerParams(
            dimension_semantics=("parallel",),
            vmem_limit_bytes=32 * 1024 * 1024),
        cost_estimate=cost,
    )(x, w0, b0, w1, b1, w2t, b2)

    # std is state-independent (learned parameter); trivial scalar math in the
    # wrapper, matching torch.clamp(torch.exp(log_std), 0.001, 50).
    std = jnp.clip(jnp.exp(params["log_std"]), 1e-3, 50.0)
    return mean, std


def init_params(key, input_dim, hidden_units, output_dim):
    """Deterministic init mimicking torch.nn.Linear (uniform +-1/sqrt(fan_in))."""
    dims = [input_dim] + list(hidden_units) + [output_dim]
    params = {}
    for i, (fan_in, fan_out) in enumerate(zip(dims[:-1], dims[1:])):
        key, kw, kb = jax.random.split(key, 3)
        bound = 1.0 / jnp.sqrt(jnp.float32(fan_in))
        params[f"w{i}"] = jax.random.uniform(
            kw, (fan_in, fan_out), jnp.float32, -bound, bound)
        params[f"b{i}"] = jax.random.uniform(
            kb, (1, fan_out), jnp.float32, -bound, bound)
    # nn.Parameter(torch.full((output_dim,), log(0.1)))
    params["log_std"] = jnp.full((output_dim,), jnp.log(jnp.float32(0.1)))
    return params


def _reference_forward(x, params):
    h = jnp.maximum(x @ params["w0"] + params["b0"], 0.0)
    h = jnp.maximum(h @ params["w1"] + params["b1"], 0.0)
    mean = h @ params["w2"] + params["b2"]
    std = jnp.clip(jnp.exp(params["log_std"]), 1e-3, 50.0)
    return mean, std


if __name__ == "__main__":
    key = jax.random.PRNGKey(0)
    key, kx_small, kx_big, kx_ragged = jax.random.split(key, 4)
    params = init_params(key, INPUT_DIM, HIDDEN_UNITS, OUTPUT_DIM)

    # Small demo batch (single grid step).
    BATCH = 8
    x = jax.random.normal(kx_small, (BATCH, INPUT_DIM), jnp.float32)
    mean, std = gaussian_fcn_forward(x, params)
    jax.block_until_ready((mean, std))

    ref_mean, ref_std = _reference_forward(x, params)
    assert mean.shape == (BATCH, OUTPUT_DIM)
    assert std.shape == (OUTPUT_DIM,)
    assert jnp.allclose(mean, ref_mean, atol=1e-4, rtol=1e-4)
    assert jnp.allclose(std, ref_std, atol=1e-6, rtol=1e-6)

    # Larger batch exercising a multi-step batch grid (4 grid steps).
    BIG_BATCH = 2048
    xb = jax.random.normal(kx_big, (BIG_BATCH, INPUT_DIM), jnp.float32)
    mean_b, _ = gaussian_fcn_forward(xb, params, block_rows=512)
    jax.block_until_ready(mean_b)
    ref_mean_b, _ = _reference_forward(xb, params)
    assert mean_b.shape == (BIG_BATCH, OUTPUT_DIM)
    assert jnp.allclose(mean_b, ref_mean_b, atol=1e-4, rtol=1e-4)

    # Ragged batch (not a multiple of the tile): exercises the partial last block.
    RAGGED = 1000
    xr = jax.random.normal(kx_ragged, (RAGGED, INPUT_DIM), jnp.float32)
    mean_r, _ = gaussian_fcn_forward(xr, params)
    jax.block_until_ready(mean_r)
    ref_mean_r, _ = _reference_forward(xr, params)
    assert mean_r.shape == (RAGGED, OUTPUT_DIM)
    assert jnp.allclose(mean_r, ref_mean_r, atol=1e-4, rtol=1e-4)

    # TODO(synk): log_prob / sample (Normal log-density, tanh-squashed sampling)
    # are thin host-side wrappers over (mean, std) and are not implemented as
    # separate kernels here.
    print("KERNEL_OK")
</pallas_src>

<mosaic_0001>
module attributes {stable_mosaic.version = 11 : i64} {
  func.func @_mlp_kernel(%arg0: i32, %arg1: memref<8x4xf32, #tpu.memory_space<vmem>>, %arg2: memref<4x128xf32, #tpu.memory_space<vmem>>, %arg3: memref<1x128xf32, #tpu.memory_space<vmem>>, %arg4: memref<128x128xf32, #tpu.memory_space<vmem>>, %arg5: memref<1x128xf32, #tpu.memory_space<vmem>>, %arg6: memref<1x128xf32, #tpu.memory_space<vmem>>, %arg7: memref<1x1xf32, #tpu.memory_space<vmem>>, %arg8: memref<8x1xf32, #tpu.memory_space<vmem>>) attributes {dimension_semantics = [#tpu.dimension_semantics<parallel>], iteration_bounds = array<i64: 1>, scalar_prefetch = 0 : i64, scratch_operands = 0 : i64, tpu.core_type = #tpu.core_type<tc>, window_params = [{transform_indices = @transform_0, window_bounds = array<i64: 8, 4>}, {pipeline_mode = #tpu.pipeline_mode<synchronous>, transform_indices = @transform_1, window_bounds = array<i64: 4, 128>}, {pipeline_mode = #tpu.pipeline_mode<synchronous>, transform_indices = @transform_2, window_bounds = array<i64: 1, 128>}, {pipeline_mode = #tpu.pipeline_mode<synchronous>, transform_indices = @transform_3, window_bounds = array<i64: 128, 128>}, {pipeline_mode = #tpu.pipeline_mode<synchronous>, transform_indices = @transform_4, window_bounds = array<i64: 1, 128>}, {pipeline_mode = #tpu.pipeline_mode<synchronous>, transform_indices = @transform_5, window_bounds = array<i64: 1, 128>}, {pipeline_mode = #tpu.pipeline_mode<synchronous>, transform_indices = @transform_6, window_bounds = array<i64: 1, 1>}, {transform_indices = @transform_7, window_bounds = array<i64: 8, 1>}]} {
    %c0 = arith.constant 0 : index
    %c0_0 = arith.constant 0 : index
    %0 = vector.load %arg1[%c0, %c0_0] : memref<8x4xf32, #tpu.memory_space<vmem>>, vector<8x4xf32>
    %c0_1 = arith.constant 0 : index
    %c0_2 = arith.constant 0 : index
    %1 = vector.load %arg3[%c0_1, %c0_2] : memref<1x128xf32, #tpu.memory_space<vmem>>, vector<1x128xf32>
    %2 = vector.extract_strided_slice %0 {offsets = [0, 0], sizes = [8, 1], strides = [1, 1]} : vector<8x4xf32> to vector<8x1xf32>
    %c0_3 = arith.constant 0 : index
    %c0_4 = arith.constant 0 : index
    %3 = vector.load %arg2[%c0_3, %c0_4] : memref<4x128xf32, #tpu.memory_space<vmem>>, vector<1x128xf32>
    %4 = vector.broadcast %2 : vector<8x1xf32> to vector<8x128xf32>
    %5 = vector.broadcast %3 : vector<1x128xf32> to vector<8x128xf32>
    %6 = arith.mulf %4, %5 : vector<8x128xf32>
    %7 = vector.broadcast %1 : vector<1x128xf32> to vector<8x128xf32>
    %8 = arith.addf %7, %6 : vector<8x128xf32>
    %9 = vector.extract_strided_slice %0 {offsets = [0, 1], sizes = [8, 1], strides = [1, 1]} : vector<8x4xf32> to vector<8x1xf32>
    %c1 = arith.constant 1 : index
    %c0_5 = arith.constant 0 : index
    %10 = vector.load %arg2[%c1, %c0_5] : memref<4x128xf32, #tpu.memory_space<vmem>>, vector<1x128xf32>
    %11 = vector.broadcast %9 : vector<8x1xf32> to vector<8x128xf32>
    %12 = vector.broadcast %10 : vector<1x128xf32> to vector<8x128xf32>
    %13 = arith.mulf %11, %12 : vector<8x128xf32>
    %14 = arith.addf %8, %13 : vector<8x128xf32>
    %15 = vector.extract_strided_slice %0 {offsets = [0, 2], sizes = [8, 1], strides = [1, 1]} : vector<8x4xf32> to vector<8x1xf32>
    %c2 = arith.constant 2 : index
    %c0_6 = arith.constant 0 : index
    %16 = vector.load %arg2[%c2, %c0_6] : memref<4x128xf32, #tpu.memory_space<vmem>>, vector<1x128xf32>
    %17 = vector.broadcast %15 : vector<8x1xf32> to vector<8x128xf32>
    %18 = vector.broadcast %16 : vector<1x128xf32> to vector<8x128xf32>
    %19 = arith.mulf %17, %18 : vector<8x128xf32>
    %20 = arith.addf %14, %19 : vector<8x128xf32>
    %21 = vector.extract_strided_slice %0 {offsets = [0, 3], sizes = [8, 1], strides = [1, 1]} : vector<8x4xf32> to vector<8x1xf32>
    %c3 = arith.constant 3 : index
    %c0_7 = arith.constant 0 : index
    %22 = vector.load %arg2[%c3, %c0_7] : memref<4x128xf32, #tpu.memory_space<vmem>>, vector<1x128xf32>
    %23 = vector.broadcast %21 : vector<8x1xf32> to vector<8x128xf32>
    %24 = vector.broadcast %22 : vector<1x128xf32> to vector<8x128xf32>
    %25 = arith.mulf %23, %24 : vector<8x128xf32>
    %26 = arith.addf %20, %25 : vector<8x128xf32>
    %cst = arith.constant 0.000000e+00 : f32
    %27 = vector.broadcast %cst : f32 to vector<8x128xf32>
    %28 = arith.maximumf %26, %27 : vector<8x128xf32>
    %c0_8 = arith.constant 0 : index
    %c0_9 = arith.constant 0 : index
    %29 = vector.load %arg4[%c0_8, %c0_9] : memref<128x128xf32, #tpu.memory_space<vmem>>, vector<128x128xf32>
    %cst_10 = arith.constant dense<0.000000e+00> : vector<8x128xf32>
    %30 = tpu.matmul %28, %29, %cst_10 {dimension_numbers = #tpu.dot_dimension_numbers<[1], [0], [0], [1], [0, 0, 1, 1], [], []>} : vector<8x128xf32>, vector<128x128xf32>, vector<8x128xf32> -> vector<8x128xf32>
    %c0_11 = arith.constant 0 : index
    %c0_12 = arith.constant 0 : index
    %31 = vector.load %arg5[%c0_11, %c0_12] : memref<1x128xf32, #tpu.memory_space<vmem>>, vector<1x128xf32>
    %32 = vector.broadcast %31 : vector<1x128xf32> to vector<8x128xf32>
    %33 = arith.addf %30, %32 : vector<8x128xf32>
    %cst_13 = arith.constant 0.000000e+00 : f32
    %34 = vector.broadcast %cst_13 : f32 to vector<8x128xf32>
    %35 = arith.maximumf %33, %34 : vector<8x128xf32>
    %c0_14 = arith.constant 0 : index
    %c0_15 = arith.constant 0 : index
    %36 = vector.load %arg6[%c0_14, %c0_15] : memref<1x128xf32, #tpu.memory_space<vmem>>, vector<1x128xf32>
    %37 = vector.broadcast %36 : vector<1x128xf32> to vector<8x128xf32>
    %38 = arith.mulf %35, %37 : vector<8x128xf32>
    %cst_16 = arith.constant dense<0.000000e+00> : vector<8xf32>
    %39 = vector.multi_reduction <add>, %38, %cst_16 [1] : vector<8x128xf32> to vector<8xf32>
    %40 = vector.shape_cast %39 : vector<8xf32> to vector<8x1xf32>
    %c0_17 = arith.constant 0 : index
    %c0_18 = arith.constant 0 : index
    %41 = vector.load %arg7[%c0_17, %c0_18] : memref<1x1xf32, #tpu.memory_space<vmem>>, vector<1x1xf32>
    %42 = vector.broadcast %41 : vector<1x1xf32> to vector<8x1xf32>
    %43 = arith.addf %40, %42 : vector<8x1xf32>
    %c0_19 = arith.constant 0 : index
    %c0_20 = arith.constant 0 : index
    %44 = vector.load %arg8[%c0_19, %c0_20] : memref<8x1xf32, #tpu.memory_space<vmem>>, vector<8x1xf32>
    tpu.vector_store %arg8[%c0_19, %c0_20], %43 {strides = array<i32>} : memref<8x1xf32, #tpu.memory_space<vmem>>, vector<8x1xf32>,
    return
  }
  func.func @transform_0(%arg0: i32) -> (i32, i32) {
    %c0_i32 = arith.constant 0 : i32
    %c0_i32_0 = arith.constant 0 : i32
    return %arg0, %c0_i32 : i32, i32
  }
  func.func @transform_1(%arg0: i32) -> (i32, i32) {
    %c0_i32 = arith.constant 0 : i32
    %c0_i32_0 = arith.constant 0 : i32
    %c0_i32_1 = arith.constant 0 : i32
    return %c0_i32, %c0_i32_0 : i32, i32
  }
  func.func @transform_2(%arg0: i32) -> (i32, i32) {
    %c0_i32 = arith.constant 0 : i32
    %c0_i32_0 = arith.constant 0 : i32
    %c0_i32_1 = arith.constant 0 : i32
    return %c0_i32, %c0_i32_0 : i32, i32
  }
  func.func @transform_3(%arg0: i32) -> (i32, i32) {
    %c0_i32 = arith.constant 0 : i32
    %c0_i32_0 = arith.constant 0 : i32
    %c0_i32_1 = arith.constant 0 : i32
    return %c0_i32, %c0_i32_0 : i32, i32
  }
  func.func @transform_4(%arg0: i32) -> (i32, i32) {
    %c0_i32 = arith.constant 0 : i32
    %c0_i32_0 = arith.constant 0 : i32
    %c0_i32_1 = arith.constant 0 : i32
    return %c0_i32, %c0_i32_0 : i32, i32
  }
  func.func @transform_5(%arg0: i32) -> (i32, i32) {
    %c0_i32 = arith.constant 0 : i32
    %c0_i32_0 = arith.constant 0 : i32
    %c0_i32_1 = arith.constant 0 : i32
    return %c0_i32, %c0_i32_0 : i32, i32
  }
  func.func @transform_6(%arg0: i32) -> (i32, i32) {
    %c0_i32 = arith.constant 0 : i32
    %c0_i32_0 = arith.constant 0 : i32
    %c0_i32_1 = arith.constant 0 : i32
    return %c0_i32, %c0_i32_0 : i32, i32
  }
  func.func @transform_7(%arg0: i32) -> (i32, i32) {
    %c0_i32 = arith.constant 0 : i32
    %c0_i32_0 = arith.constant 0 : i32
    return %arg0, %c0_i32 : i32, i32
  }
}

</mosaic_0001>

<bundles_post_ra>
// kernel: gaussian_fcn_forward.1
= control target key start
LH: loop header
LB: loop body
LE: loop exit
PB: predicated region body
PF: predicated region fallthrough
CT: control target
= control target key end

     0   :  { %v143_v0 = vmov 0   ;;  %v144_v2 = vmov 2   ;;  %v145_v8 = vmov 1   ;;  %v146_v9 = vmov 3   ;;  %s265_s0 = inlined_call_operand.vmem [shape: f32[8,4], index: 0, kind: input, shape index: {}]   ;;  %s266_s3 = inlined_call_operand.vmem [shape: f32[128,128], index: 3, kind: input, shape index: {}]   ;;  %s267_s1 = inlined_call_operand.vmem [shape: f32[4,128], index: 1, kind: input, shape index: {}]   ;;  %s268_s2 = inlined_call_operand.vmem [shape: f32[1,128], index: 2, kind: input, shape index: {}]   ;;  %s269_s4 = inlined_call_operand.vmem [shape: f32[1,128], index: 4, kind: input, shape index: {}]   ;;  %s270_s5 = inlined_call_operand.vmem [shape: f32[1,128], index: 5, kind: input, shape index: {}]   ;;  %s271_s6 = inlined_call_operand.<no memory space> [shape: f32[1,1], index: 6, kind: input, shape index: {}]   ;;  %s272_s7 = inlined_call_operand.vmem [shape: f32[8,1], index: 7, kind: output, shape index: {}]  }
   0x1   :  { %130 = vset.pattern.permute.xlu0 %v143_v0  ;;  %v28_v1 = vld [vmem:[%s265_s0] sm:$0xff]  ;;  %132 = vset.pattern.permute.xlu1 %v144_v2  ;;  %v82_v3 = vld [vmem:[%s266_s3 + $0x78] sm:$0xff]  ;;  %v81_v4 = vld [vmem:[%s266_s3 + $0x70] sm:$0xff]  ;;  %v12_v39 = vstv %s271_s6  ;;  %vm120_vm0 = vcmask 7168  }
   0x2   :  { %33 = vperm.xlu0 %130, %v28_v1   ;;  %52 = vperm.xlu1 %132, %v28_v1   ;;  %v80_v5 = vld [vmem:[%s266_s3 + $0x68] sm:$0xff]  ;;  %v79_v6 = vld [vmem:[%s266_s3 + $0x60] sm:$0xff]  ;;  %v78_v7 = vld [vmem:[%s266_s3 + $0x58] sm:$0xff]  ;;  %13 = vst [vmem:[#allocation2] sm:$0x1] %v12_v39 }
   0x3   :  { %87 = vmatpush.msra.mxu0 %v82_v3  ;;  %v77_v10 = vld [vmem:[%s266_s3 + $0x50] sm:$0xff]  ;;  %v76_v11 = vld [vmem:[%s266_s3 + $0x48] sm:$0xff]  ;;  %v75_v12 = vld [vmem:[%s266_s3 + $0x40] sm:$0xff] }
   0x4   :  { %v74_v13 = vld [vmem:[%s266_s3 + $0x38] sm:$0xff]  ;;  %v73_v14 = vld [vmem:[%s266_s3 + $0x30] sm:$0xff]  ;;  %v72_v15 = vld [vmem:[%s266_s3 + $0x28] sm:$0xff] }
   0x5   :  { %88 = vmatpush.msra.mxu0 %v81_v4  ;;  %v71_v16 = vld [vmem:[%s266_s3 + $0x20] sm:$0xff]  ;;  %v70_v17 = vld [vmem:[%s266_s3 + $0x18] sm:$0xff]  ;;  %v69_v18 = vld [vmem:[%s266_s3 + $0x10] sm:$0xff] }
   0x6   :  { %v68_v19 = vld [vmem:[%s266_s3 + $0x8] sm:$0xff]  ;;  %v67_v20 = vld [vmem:[%s266_s3] sm:$0xff] }
   0x7   :  { %89 = vmatpush.msra.mxu0 %v80_v5  ;;  %v135_v23 = vld [vmem:[%s267_s1] ss:$0 sm:$0xff]  ;;  %v138_v26 = vld [vmem:[%s267_s1 + $0x1] ss:$0 sm:$0xff]  ;;  %v137_v27 = vld [vmem:[%s267_s1 + $0x2] ss:$0 sm:$0xff] }
   0x8   :  { %v136_v24 = vld [vmem:[%s268_s2] ss:$0 sm:$0xff]  ;;  %v139_v28 = vld [vmem:[%s267_s1 + $0x3] ss:$0 sm:$0xff] }
   0x9   :  { %90 = vmatpush.msra.mxu0 %v79_v6  ;;  %v140_v40 = vld [vmem:[%s269_s4] ss:$0 sm:$0xff] }
   0xa   :  { %131 = vset.pattern.permute.xlu0 %v145_v8  ;;  %133 = vset.pattern.permute.xlu1 %v146_v9  ;;  %v141_v43 = vld [vmem:[%s270_s5] ss:$0 sm:$0xff] }
   0xb   :  { %44 = vperm.xlu0 %131, %v28_v1   ;;  %60 = vperm.xlu1 %133, %v28_v1   ;;  %v142_v46 = vld [vmem:[#allocation2] ss:$0 sm:$0xff] }
   0xc   :  { %91 = vmatpush.msra.mxu0 %v78_v7 }
   0xe   :  { %92 = vmatpush.msra.mxu0 %v77_v10 }
  0x10   :  { %93 = vmatpush.msra.mxu0 %v76_v11 }
  0x12   :  { %94 = vmatpush.msra.mxu0 %v75_v12 }
  0x13   :  { %134 = vset.pattern.permute.xlu0 %v146_v9 }
  0x14   :  { %95 = vmatpush.msra.mxu0 %v74_v13 }
  0x16   :  { %96 = vmatpush.msra.mxu0 %v73_v14 }
  0x18   :  { %97 = vmatpush.msra.mxu0 %v72_v15 }
  0x1a   :  { %98 = vmatpush.msra.mxu0 %v71_v16 }
  0x1c   :  { %99 = vmatpush.msra.mxu0 %v70_v17 }
  0x1e   :  { %100 = vmatpush.msra.mxu0 %v69_v18 }
  0x20   :  { %101 = vmatpush.msra.mxu0 %v68_v19 }
  0x22   :  { %102 = vmatpush.msra.mxu0 %v67_v20 }
  0x74   :  { %v34_v21 = vpop.permute.xlu0 %33  ;;  %v53_v22 = vpop.permute.xlu1 %52 }
  0x75   :  { %v37_v25 = vmul.f32 %v135_v23, %v34_v21  ;;  %v56_v33 = vmul.f32 %v137_v27, %v53_v22 }
  0x77   :  { %v41_v31 = vadd.f32 %v136_v24, %v37_v25 }
  0x7d   :  { %v45_v29 = vpop.permute.xlu0 %44  ;;  %v61_v30 = vpop.permute.xlu1 %60 }
  0x7e   :  { %v48_v32 = vmul.f32 %v138_v26, %v45_v29  ;;  %v64_v35 = vmul.f32 %v139_v28, %v61_v30 }
  0x80   :  { %v49_v34 = vadd.f32 %v48_v32, %v41_v31 }
  0x82   :  { %v57_v36 = vadd.f32 %v56_v33, %v49_v34 }
  0x84   :  { %v65_v37 = vadd.f32 %v64_v35, %v57_v36 }
  0x86   :  { %v66_v38 = vmax.f32 %v65_v37, 0.0 }
  0x88   :  { %103 = vmatmul.f32.vlgmr.msra.gmra.mxu0 %v66_v38 }
 0x105   :  { %v104_v41 = vpop.f32.mrf.mxu0 }
 0x106   :  { %v105_v42 = vadd.f32 %v140_v40, %v104_v41 }
 0x108   :  { %v107_v44 = vmax.f32 %v105_v42, 0.0 }
 0x10a   :  { %v112_v45 = vmul.f32 %v141_v43, %v107_v44 }
 0x10c   :  { %113 = vadd.xlane.f32.xlu2 %v112_v45 }
 0x17f   :  { %v114_v47 = vpop.xlane.xlu2 %113 }
 0x180   :  { %v119_v48 = vadd.f32 %v142_v46, %v114_v47 }
 0x182   :  { %121 = vst.msk [vmem:[%s272_s7] sm:$0xff] %vm120_vm0, %v119_v48 }

</bundles_post_ra>
